<compile_context>
chip_gen: v7x
topology: tpu7x:2x2x1
jax: 0.10.0
libtpu: 0.0.40
codegen_flags: <defaults>
</compile_context>

<pallas_src>
import jax
import jax.numpy as jnp
from jax.experimental import pallas as pl
from jax.experimental.pallas import tpu as pltpu


def _self_attention_kernel(x_ref, w1_ref, b1_ref, w2_ref, b2_ref,
                           att_ref, wts_ref):
    BT, S, F = x_ref.shape
    A = w1_ref.shape[1]

    x3 = x_ref[...]                                        # (BT, S, F)
    x2 = x3.reshape(BT * S, F)                             # collapse leading dims

    # Linear(F, A) + Tanh : one MXU matmul over all BT*S rows, f32 accumulation.
    h = jnp.tanh(
        jnp.dot(x2, w1_ref[...], preferred_element_type=jnp.float32)
        + b1_ref[...]                                      # (1, A) broadcast
    )                                                      # (BT*S, A) f32

    # Linear(A, 1) as VPU multiply + lane reduction (an (.,A)x(A,1) MXU matmul
    # would use a single MXU column and a lane-sparse result FIFO).
    hw = h * w2_ref[...].astype(jnp.float32)               # (BT*S, A)
    s3 = (jnp.sum(hw.reshape(BT, S, A), axis=-1, keepdims=True)
          + b2_ref[...].reshape(1, 1, 1))                  # (BT, S, 1)

    # Max-stabilized softmax over the sequence axis, independently per batch.
    # Exact division so the weights sum to 1 within f32 rounding.
    m3 = jnp.max(s3, axis=1, keepdims=True)                # (BT, 1, 1)
    p3 = jnp.exp(s3 - m3)                                  # (BT, S, 1)
    d3 = jnp.sum(p3, axis=1, keepdims=True)                # (BT, 1, 1)
    w3 = p3 / d3                                           # (BT, S, 1)

    wts_ref[...] = w3.astype(wts_ref.dtype)
    att_ref[...] = (x3 * w3).astype(att_ref.dtype)         # broadcast over F lanes


def _choose_batch_tile(B, S, F, A, itemsize, vmem_budget_bytes=16 << 20):
    """Pick how many batch elements to process per grid step.

    Budget ~16 MiB for the double-buffered x / attended tiles plus the f32
    hidden activation -- conservative enough for v7x's 64 MiB VMEM and v5e/v6e.
    Cap so the grid keeps >= 2 steps (both v7x TensorCores get work), and force
    BT to divide B so every block is full.
    """
    per_batch = S * (4 * F * itemsize      # x-in + attended-out, double-buffered
                     + 4 * (F + A)         # f32 temporaries (x rows, h rows)
                     + 64)                 # scores / weights / slack
    bt = max(1, vmem_budget_bytes // max(per_batch, 1))
    if B >= 2:
        bt = min(bt, (B + 1) // 2)         # keep >= 2 grid steps
    bt = min(bt, B)
    while B % bt:
        bt -= 1
    return int(bt)


def self_attention(x, w1, b1, w2, b2, *, batch_tile=None):
    """x: (B, S, F); w1: (F, A); b1: (A,); w2: (A, 1); b2: (1,).

    Returns (attended_features (B, S, F), attention_weights (B, S, 1)).
    Note: S is ideally a multiple of 8 (sublane tile) for the cheapest layout.
    """
    B, S, F = x.shape
    A = w1.shape[1]

    bt = batch_tile if batch_tile is not None else _choose_batch_tile(
        B, S, F, A, x.dtype.itemsize)

    w1c = w1.astype(x.dtype)                       # keep bf16 weights bf16 on MXU
    w2_row = w2.reshape(1, A).astype(x.dtype)      # (1, A) row for the VPU reduce
    b1_2d = b1.reshape(1, A).astype(jnp.float32)
    b2_2d = b2.reshape(1, 1).astype(jnp.float32)

    out_shapes = (
        jax.ShapeDtypeStruct((B, S, F), x.dtype),  # attended_features
        jax.ShapeDtypeStruct((B, S, 1), x.dtype),  # attention_weights
    )

    grid_spec = pltpu.PrefetchScalarGridSpec(
        num_scalar_prefetch=0,
        grid=(B // bt,),
        in_specs=[
            pl.BlockSpec((bt, S, F), lambda b: (b, 0, 0)),   # x, batch-tiled
            pl.BlockSpec((F, A), lambda b: (0, 0)),          # W1 (constant block)
            pl.BlockSpec((1, A), lambda b: (0, 0)),          # b1
            pl.BlockSpec((1, A), lambda b: (0, 0)),          # W2 as a row
            pl.BlockSpec((1, 1), lambda b: (0, 0)),          # b2
        ],
        out_specs=[
            pl.BlockSpec((bt, S, F), lambda b: (b, 0, 0)),
            pl.BlockSpec((bt, S, 1), lambda b: (b, 0, 0)),
        ],
    )

    attended, weights = pl.pallas_call(
        _self_attention_kernel,
        out_shape=out_shapes,
        grid_spec=grid_spec,
        compiler_params=pltpu.CompilerParams(
            dimension_semantics=("parallel",),        # shards batch steps on v7x
            vmem_limit_bytes=48 * 1024 * 1024,        # headroom for larger tiles
        ),
    )(x, w1c, b1_2d, w2_row, b2_2d)

    return attended, weights


def _reference(x, w1, b1, w2, b2):
    """Pure-JAX reference matching the PyTorch forward exactly."""
    hp = jax.lax.Precision.HIGHEST
    h = jnp.tanh(jnp.einsum("bsf,fa->bsa", x, w1, precision=hp) + b1)   # (B, S, A)
    s = jnp.einsum("bsa,ao->bso", h, w2, precision=hp) + b2             # (B, S, 1)
    w = jax.nn.softmax(s, axis=1)                                       # softmax over S
    return x * w, w


if __name__ == "__main__":
    key = jax.random.PRNGKey(0)
    k_x, k_w1, k_b1, k_w2, k_b2 = jax.random.split(key, 5)

    B, S, F, A = 2, 8, 32, 64   # batch, seq, feature_dim, attention_dim

    x = jax.random.normal(k_x, (B, S, F), dtype=jnp.float32)
    # Deterministic synthetic parameters (roughly torch Linear init scale).
    w1 = jax.random.uniform(k_w1, (F, A), jnp.float32, -1.0, 1.0) / jnp.sqrt(F)
    b1 = jax.random.uniform(k_b1, (A,), jnp.float32, -1.0, 1.0) / jnp.sqrt(F)
    w2 = jax.random.uniform(k_w2, (A, 1), jnp.float32, -1.0, 1.0) / jnp.sqrt(A)
    b2 = jax.random.uniform(k_b2, (1,), jnp.float32, -1.0, 1.0) / jnp.sqrt(A)

    attended, weights = self_attention(x, w1, b1, w2, b2)
    jax.block_until_ready((attended, weights))

    ref_att, ref_w = _reference(x, w1, b1, w2, b2)
    assert jnp.allclose(attended, ref_att, atol=2e-3, rtol=2e-3), "attended mismatch"
    assert jnp.allclose(weights, ref_w, atol=2e-3, rtol=2e-3), "weights mismatch"
    assert jnp.allclose(jnp.sum(weights, axis=1), 1.0, atol=1e-3), "softmax not normalized"

    print("KERNEL_OK")
</pallas_src>

<mosaic_0001>
module attributes {stable_mosaic.version = 11 : i64} {
  func.func @_self_attention_kernel(%arg0: i32, %arg1: memref<1x8x32xf32, #tpu.memory_space<vmem>>, %arg2: memref<32x64xf32, #tpu.memory_space<vmem>>, %arg3: memref<1x64xf32, #tpu.memory_space<vmem>>, %arg4: memref<1x64xf32, #tpu.memory_space<vmem>>, %arg5: memref<1x1xf32, #tpu.memory_space<vmem>>, %arg6: memref<1x8x32xf32, #tpu.memory_space<vmem>>, %arg7: memref<1x8x1xf32, #tpu.memory_space<vmem>>) attributes {dimension_semantics = [#tpu.dimension_semantics<parallel>], iteration_bounds = array<i64: 2>, scalar_prefetch = 0 : i64, scratch_operands = 0 : i64, tpu.core_type = #tpu.core_type<tc>, window_params = [{transform_indices = @transform_0, window_bounds = array<i64: 1, 8, 32>}, {pipeline_mode = #tpu.pipeline_mode<synchronous>, transform_indices = @transform_1, window_bounds = array<i64: 32, 64>}, {pipeline_mode = #tpu.pipeline_mode<synchronous>, transform_indices = @transform_2, window_bounds = array<i64: 1, 64>}, {pipeline_mode = #tpu.pipeline_mode<synchronous>, transform_indices = @transform_3, window_bounds = array<i64: 1, 64>}, {pipeline_mode = #tpu.pipeline_mode<synchronous>, transform_indices = @transform_4, window_bounds = array<i64: 1, 1>}, {transform_indices = @transform_5, window_bounds = array<i64: 1, 8, 32>}, {transform_indices = @transform_6, window_bounds = array<i64: 1, 8, 1>}]} {
    %c0 = arith.constant 0 : index
    %c0_0 = arith.constant 0 : index
    %c0_1 = arith.constant 0 : index
    %0 = vector.load %arg1[%c0, %c0_0, %c0_1] : memref<1x8x32xf32, #tpu.memory_space<vmem>>, vector<1x8x32xf32>
    %1 = vector.shape_cast %0 : vector<1x8x32xf32> to vector<8x32xf32>
    %c0_2 = arith.constant 0 : index
    %c0_3 = arith.constant 0 : index
    %2 = vector.load %arg2[%c0_2, %c0_3] : memref<32x64xf32, #tpu.memory_space<vmem>>, vector<32x64xf32>
    %cst = arith.constant dense<0.000000e+00> : vector<8x64xf32>
    %3 = tpu.matmul %1, %2, %cst {dimension_numbers = #tpu.dot_dimension_numbers<[1], [0], [0], [1], [0, 0, 1, 1], [], []>} : vector<8x32xf32>, vector<32x64xf32>, vector<8x64xf32> -> vector<8x64xf32>
    %c0_4 = arith.constant 0 : index
    %c0_5 = arith.constant 0 : index
    %4 = vector.load %arg3[%c0_4, %c0_5] : memref<1x64xf32, #tpu.memory_space<vmem>>, vector<1x64xf32>
    %5 = vector.broadcast %4 : vector<1x64xf32> to vector<8x64xf32>
    %6 = arith.addf %3, %5 : vector<8x64xf32>
    %7 = math.tanh %6 : vector<8x64xf32>
    %c0_6 = arith.constant 0 : index
    %c0_7 = arith.constant 0 : index
    %8 = vector.load %arg4[%c0_6, %c0_7] : memref<1x64xf32, #tpu.memory_space<vmem>>, vector<1x64xf32>
    %9 = vector.broadcast %8 : vector<1x64xf32> to vector<8x64xf32>
    %10 = arith.mulf %7, %9 : vector<8x64xf32>
    %11 = vector.shape_cast %10 : vector<8x64xf32> to vector<1x8x64xf32>
    %cst_8 = arith.constant dense<0.000000e+00> : vector<1x8xf32>
    %12 = vector.multi_reduction <add>, %11, %cst_8 [2] : vector<1x8x64xf32> to vector<1x8xf32>
    %13 = vector.shape_cast %12 : vector<1x8xf32> to vector<1x8x1xf32>
    %c0_9 = arith.constant 0 : index
    %c0_10 = arith.constant 0 : index
    %14 = vector.load %arg5[%c0_9, %c0_10] : memref<1x1xf32, #tpu.memory_space<vmem>>, vector<1x1xf32>
    %15 = vector.shape_cast %14 : vector<1x1xf32> to vector<1x1x1xf32>
    %16 = vector.broadcast %15 : vector<1x1x1xf32> to vector<1x8x1xf32>
    %17 = arith.addf %13, %16 : vector<1x8x1xf32>
    %cst_11 = arith.constant dense<0xFF800000> : vector<1x1xf32>
    %18 = vector.multi_reduction <maximumf>, %17, %cst_11 [1] : vector<1x8x1xf32> to vector<1x1xf32>
    %19 = vector.shape_cast %18 : vector<1x1xf32> to vector<1x1x1xf32>
    %20 = vector.broadcast %19 : vector<1x1x1xf32> to vector<1x8x1xf32>
    %21 = arith.subf %17, %20 : vector<1x8x1xf32>
    %22 = math.exp %21 : vector<1x8x1xf32>
    %cst_12 = arith.constant dense<0.000000e+00> : vector<1x1xf32>
    %23 = vector.multi_reduction <add>, %22, %cst_12 [1] : vector<1x8x1xf32> to vector<1x1xf32>
    %24 = vector.shape_cast %23 : vector<1x1xf32> to vector<1x1x1xf32>
    %25 = vector.broadcast %24 : vector<1x1x1xf32> to vector<1x8x1xf32>
    %26 = arith.divf %22, %25 : vector<1x8x1xf32>
    %c0_13 = arith.constant 0 : index
    %c0_14 = arith.constant 0 : index
    %c0_15 = arith.constant 0 : index
    %27 = vector.load %arg7[%c0_13, %c0_14, %c0_15] : memref<1x8x1xf32, #tpu.memory_space<vmem>>, vector<1x8x1xf32>
    tpu.vector_store %arg7[%c0_13, %c0_14, %c0_15], %26 {strides = array<i32>} : memref<1x8x1xf32, #tpu.memory_space<vmem>>, vector<1x8x1xf32>,
    %28 = vector.broadcast %26 : vector<1x8x1xf32> to vector<1x8x32xf32>
    %29 = arith.mulf %0, %28 : vector<1x8x32xf32>
    %c0_16 = arith.constant 0 : index
    %c0_17 = arith.constant 0 : index
    %c0_18 = arith.constant 0 : index
    %30 = vector.load %arg6[%c0_16, %c0_17, %c0_18] : memref<1x8x32xf32, #tpu.memory_space<vmem>>, vector<1x8x32xf32>
    tpu.vector_store %arg6[%c0_16, %c0_17, %c0_18], %29 {strides = array<i32>} : memref<1x8x32xf32, #tpu.memory_space<vmem>>, vector<1x8x32xf32>,
    return
  }
  func.func @transform_0(%arg0: i32) -> (i32, i32, i32) {
    %c0_i32 = arith.constant 0 : i32
    %c0_i32_0 = arith.constant 0 : i32
    %c0_i32_1 = arith.constant 0 : i32
    return %arg0, %c0_i32, %c0_i32_0 : i32, i32, i32
  }
  func.func @transform_1(%arg0: i32) -> (i32, i32) {
    %c0_i32 = arith.constant 0 : i32
    %c0_i32_0 = arith.constant 0 : i32
    %c0_i32_1 = arith.constant 0 : i32
    return %c0_i32, %c0_i32_0 : i32, i32
  }
  func.func @transform_2(%arg0: i32) -> (i32, i32) {
    %c0_i32 = arith.constant 0 : i32
    %c0_i32_0 = arith.constant 0 : i32
    %c0_i32_1 = arith.constant 0 : i32
    return %c0_i32, %c0_i32_0 : i32, i32
  }
  func.func @transform_3(%arg0: i32) -> (i32, i32) {
    %c0_i32 = arith.constant 0 : i32
    %c0_i32_0 = arith.constant 0 : i32
    %c0_i32_1 = arith.constant 0 : i32
    return %c0_i32, %c0_i32_0 : i32, i32
  }
  func.func @transform_4(%arg0: i32) -> (i32, i32) {
    %c0_i32 = arith.constant 0 : i32
    %c0_i32_0 = arith.constant 0 : i32
    %c0_i32_1 = arith.constant 0 : i32
    return %c0_i32, %c0_i32_0 : i32, i32
  }
  func.func @transform_5(%arg0: i32) -> (i32, i32, i32) {
    %c0_i32 = arith.constant 0 : i32
    %c0_i32_0 = arith.constant 0 : i32
    %c0_i32_1 = arith.constant 0 : i32
    return %arg0, %c0_i32, %c0_i32_0 : i32, i32, i32
  }
  func.func @transform_6(%arg0: i32) -> (i32, i32, i32) {
    %c0_i32 = arith.constant 0 : i32
    %c0_i32_0 = arith.constant 0 : i32
    %c0_i32_1 = arith.constant 0 : i32
    return %arg0, %c0_i32, %c0_i32_0 : i32, i32, i32
  }
}

</mosaic_0001>

<bundles_post_ra>
// kernel: tpu_custom_call.1
= control target key start
LH: loop header
LB: loop body
LE: loop exit
PB: predicated region body
PF: predicated region fallthrough
CT: control target
= control target key end

     0   :  { %s1059_s0 = inlined_call_operand.hbm [shape: f32[2,8,32], index: 0, kind: input, shape index: {}]   ;;  %s1060_s1 = inlined_call_operand.hbm [shape: f32[32,64], index: 1, kind: input, shape index: {}]   ;;  %s1061_s2 = inlined_call_operand.vmem [shape: f32[1,64], index: 2, kind: input, shape index: {}]   ;;  %s1062_s3 = inlined_call_operand.vmem [shape: f32[1,64], index: 3, kind: input, shape index: {}]   ;;  %s1063_s4 = inlined_call_operand.<no memory space> [shape: f32[1,1], index: 4, kind: input, shape index: {}]   ;;  %s1064_s5 = inlined_call_operand.hbm [shape: f32[2,8,32], index: 5, kind: output, shape index: {0}]   ;;  %s1065_s6 = inlined_call_operand.vmem [shape: f32[2,8,1], index: 6, kind: output, shape index: {1}]  }
   0x1   :  { %v12_v0 = vstv %s1063_s4 }
   0x2   :  { %13 = vst [vmem:[#allocation2] sm:$0x1] %v12_v0 }
   0x3   :  { %14 = vsyncpa [#allocation4], 0 }
   0x4   :  { %16 = vsyncpa [#allocation4 + $0x1], 0 }
   0x5   :  { %17 = vsyncpa [#allocation7], 0 }
   0x6   :  { %18 = vsyncpa [#allocation5], 0 }
   0x7   :  { %20 = vsyncpa [#allocation5 + $0x1], 0  ;;  %s843_s23 = smov 0   ;;  %s845_s24 = smov 0  }
   0x8   :  { %s847_s25 = smov 0   ;;  %s849_s26 = smov 0  }
   0x9 LB: > { %s864_s4 = sadd.s32 4294967295, %s794_s26   ;;  %s555_s27 = sadd.s32 4294967294, %s794_s26   ;;  %s794_s26 = sphi %s849_s26, %s1085_s26   ;;  %s790_s25 = sphi %s847_s25, %s1084_s25   ;;  %s786_s24 = sphi %s845_s24, %s1083_s24   ;;  %s782_s23 = sphi %s843_s23, %s1082_s23  }
   0xa   : > { %p46_p0 = scmp.ne.s32.totalorder %s786_s24, %s782_s23  ;;  %p1066_p1 = scmp.eq.s32.totalorder %s864_s4, 0 }
   0xb   : > { %p160_p3 = scmp.eq.s32.totalorder %s555_s27, 1  ;;  %p556_p5 = scmp.ge.s32.totalorder %s794_s26, 1 }
   0xc   : > { %p873_p4 = por %p1066_p1, %p46_p0  ;;  %p193_p7 = scmp.lt.s32.totalorder %s794_s26, 3 }
   0xd   : > { %p878_p6 = por %p160_p3, %p46_p0  ;;  %s796_s7 = smov [#allocation6]  }
   0xe   : > { %s1069_s28 = scalar_select %p873_p4, 1, 0 }
   0xf   : > { %s1070_s29 = scalar_select %p878_p6, 1, 0 }
  0x10   : > { %p883_p8 = pnand %p556_p5, %p193_p7  ;;  %s205_s8 = sshll.u32 %s796_s7, 4  ;;  %s887_s8 = int_to_ptr.vmem [resolvable:$true] %s205_s8 }
  0x11   : > { %s899_s10 = sadd.s32 1, %s794_s26   ;;  %s33_s11 = sadd.s32 1, %s790_s25 }
  0x12   : > { %s1071_s30 = scalar_select %p883_p8, 1, 0 }
  0x13   : > { %p604_p9 = pneg %p883_p8  ;;  %s30_s12 = ssub.s32 %s794_s26, %s899_s10 }
  0x14   : > { %s666_s15 = scalar_lea.hbm %s1060_s1, 512 }
  0x15   : > { %p894_p11 = pnand %p604_p9, %p1066_p1  ;;  %p667_p12 = scmp.ne.s32.totalorder %s1060_s1, %s666_s15 }
  0x16   : > { %p673_p5 = scmp.lt.u32.totalorder %s666_s15, %s1060_s1 }
  0x17   : > { %p668_p13 = pneg %p894_p11 }
  0x19   : > { %p669_p0 = pnand %p668_p13, %p667_p12 }
  0x1b   : > { %p670_p3 = pneg %p669_p0 }
  0x1d   : > { %p675_p7 = pnand %p673_p5, %p670_p3 }
  0x1f   : > { %678 = shalt.err (!%p675_p7)
}
  0x20   : > { %s679_s20 = scalar_lea.vmem %s887_s8, 512  ;;  %p687_p2 = scmp.lt.s32.totalorder %s887_s8, %s887_s8 }
  0x21   : > { %p680_p9 = scmp.ne.s32.totalorder %s887_s8, %s679_s20  ;;  %p688_p6 = scmp.lt.s32.totalorder %s679_s20, %s679_s20 }
  0x23   : > { %p682_p10 = pnand %p680_p9, %p668_p13  ;;  %p689_p4 = por %p688_p6, %p687_p2 }
  0x25   : > { %p683_p1 = pneg %p682_p10 }
  0x27   : > { %p690_p8 = pnand %p689_p4, %p683_p1 }
  0x29   : > { %693 = shalt.err (!%p690_p8)
}
  0x2a   : > { %s797_s21 = smov 128   ;;  %s798_s22 = smov 8  }
  0x2b   : > { %607 = dma.hbm_to_vmem [thread:$0]  (!%p894_p11), %s1060_s1, 512, %s887_s8, [#allocation7], %s797_s21, %s797_s21, %s798_s22  }
  0x2c   : > { %p31_p2 = scmp.eq.s32.totalorder %s30_s12, 0  ;;  %p40_p1 = scmp.ne.s32.totalorder %s790_s25, %s786_s24 }
  0x2d   : > { %p41_p4 = scmp.eq.s32.totalorder %s794_s26, 0  ;;  %p617_p6 = scmp.lt.s32.totalorder %s794_s26, 2 }
  0x2e   : > { %s930_s13 = scalar_select %p31_p2, %s790_s25, %s33_s11  }
  0x2f   : > { %p42_p8 = por %p41_p4, %p40_p1  ;;  %p1073_p10 = scmp.eq.s32.totalorder %s864_s4, 1 }
  0x30   : > { %s228_s15 = sand.u32 1, %s790_s25   ;;  %s560_s16 = sshll.u32 %s794_s26, 7 }
  0x31   : > { %p934_p12 = por %p1073_p10, %p40_p1  ;;  %s559_s17 = sshll.u32 %s228_s15, 3 }
  0x32   : > { %s943_s19 = scalar_lea.hbm %s1059_s0, %s560_s16  ;;  %s232_s8 = scalar_lea.vmem [#allocation3], %s559_s17 }
  0x33   : > { %s239_s11 = sshll.u32 %s232_s8, 4  ;;  %p945_p11 = pnand %p617_p6, %p42_p8  ;;  %s949_s11 = int_to_ptr.vmem [resolvable:$true] %s239_s11 }
  0x34   : > { %s229_s20 = scalar_lea.sflag [#allocation4], %s228_s15  ;;  %s694_s21 = scalar_lea.hbm %s943_s19, 128 }
  0x35   : > { %p695_p13 = scmp.ne.s32.totalorder %s943_s19, %s694_s21  ;;  %p696_p0 = pneg %p945_p11 }
  0x36   : > { %s699_s7 = scalar_lea.hbm %s1059_s0, 256  ;;  %p700_p7 = scmp.lt.u32.totalorder %s943_s19, %s1059_s0 }
  0x37   : > { %p697_p3 = pnand %p696_p0, %p695_p13  ;;  %p701_p9 = scmp.lt.u32.totalorder %s699_s7, %s694_s21 }
  0x38   : > { %p703_p1 = scmp.lt.u32.totalorder %s694_s21, %s943_s19 }
  0x39   : > { %p698_p5 = pneg %p697_p3  ;;  %p702_p2 = por %p701_p9, %p700_p7 }
  0x3b   : > { %p704_p4 = por %p703_p1, %p702_p2 }
  0x3d   : > { %p705_p6 = pnand %p704_p4, %p698_p5 }
  0x3f   : > { %708 = shalt.err (!%p705_p6)
}
  0x40   : > { %s709_s15 = scalar_lea.vmem %s949_s11, 128  ;;  %s799_s9 = smov [#allocation3]  }
  0x41   : > { %p710_p8 = scmp.ne.s32.totalorder %s949_s11, %s709_s15  ;;  %s714_s18 = sshll.u32 %s799_s9, 4  ;;  %s715_s18 = int_to_ptr.vmem [resolvable:$false] %s714_s18 }
  0x42   : > { %s716_s8 = scalar_lea.vmem %s715_s18, 256  ;;  %p717_p3 = scmp.lt.s32.totalorder %s949_s11, %s715_s18 }
  0x43   : > { %p712_p10 = pnand %p710_p8, %p696_p0  ;;  %p718_p7 = scmp.lt.s32.totalorder %s716_s8, %s709_s15 }
  0x45   : > { %p713_p13 = pneg %p712_p10  ;;  %p719_p9 = por %p718_p7, %p717_p3 }
  0x47   : > { %p720_p2 = pnand %p719_p9, %p713_p13 }
  0x49   : > { %723 = shalt.err (!%p720_p2)
}
  0x4a   : > { %611 = dma.hbm_to_vmem [thread:$0]  (!%p945_p11), %s943_s19, 128, %s949_s11, %s229_s20  }
  0x4b   : > { %p1076_p5 = scmp.ne.s32.totalorder %s1071_s30, 0 }
  0x4c   : > { %s979_s21 = sand.u32 (!%p1076_p5), 1, %s786_s24   ;;  %p1077_p0 = scmp.ne.s32.totalorder (!%p1076_p5), %s1069_s28, 0 }
  0x4d   : > { %248 = sbr.rel (%p1076_p5) target bundleno = 668 (0x29c), region = 40  ;;  %s562_s22 = sshll.u32 (!%p1076_p5), %s979_s21, 3 }
  0x4e   : > { %s251_s27 = scalar_lea.sflag (!%p1076_p5), [#allocation4], %s979_s21  ;;  %s254_s7 = scalar_lea.vmem (!%p1076_p5), [#allocation3], %s562_s22 }
  0x54   : > { %769 = dma.done.wait (%p1077_p0), %s251_s27, 128  }
  0x55   : > { %771 = vsyncadd (%p1077_p0), %s251_s27, 4294967168  ;;  %p1078_p11 = scmp.eq.s32.totalorder %s864_s4, 0 }
  0x57   : > { %773 = dma.done.wait (%p1078_p11), [#allocation7], 512   ;;  %p1079_p1 = pmov %p1078_p11 }
  0x58   : > { %v800_v1 = vmov 0.0|0.0   ;;  %vm801_vm0 = vmmov 0   ;;  %v802_v2 = vmov 0.0   ;;  %v296_v3 = vld [vmem:[#allocation6] sm:$0xff]  ;;  %v297_v4 = vld [vmem:[#allocation6 + $0x8] sm:$0xff]  ;;  %v298_v5 = vld [vmem:[#allocation6 + $0x10] sm:$0xff] }
  0x59   : > { %775 = vsyncadd (%p1079_p1), [#allocation7], 4294966784  ;;  %590 = vmatprep.subr.bf16.mxu0 %v800_v1  ;;  %587 = vmatprep.mubr.msk.f32.mxu0 %vm801_vm0, %v802_v2  ;;  %v591_v6 = vpack.c.bf16 %v297_v4, %v296_v3  ;;  %v299_v7 = vld [vmem:[#allocation6 + $0x18] sm:$0xff]  ;;  %vm307_vm1 = vcmask 261120   ;;  %v566_v10 = vld [vmem:[%s1061_s2] ss:$0 sm:$0xff] }
  0x5a   : > { %v594_v8 = vpack.c.bf16 %v299_v7, %v298_v5  ;;  %v295_v9 = vld [vmem:[%s254_s7] sm:$0xff]  ;;  %v568_v14 = vld [vmem:[%s1062_s3] ss:$0 sm:$0xff]  ;;  %vm390_vm2 = vcmask 523264   ;;  %v803_v18 = vmov 0   ;;  %vm402_vm3 = vcmask 7168  }
  0x5b   : > { %592 = vmatpush3.bf16.msra.mxu0 %v591_v6  ;;  %659 = vset.pattern.permute.xlu0 %v803_v18  ;;  %v569_v19 = vld [vmem:[#allocation2] ss:$0 sm:$0xff]  ;;  %p291_p4 = scmp.lt.s32.totalorder %s864_s4, 1  ;;  %s571_s9 = sshll.u32 %s864_s4, 7 }
  0x5c   : > { %593 = vmatprep.subr.bf16.mxu0 %v800_v1  ;;  %s284_s18 = scalar_lea.vmem [#allocation8], %s562_s22  ;;  %s1014_s28 = scalar_lea.hbm %s1064_s5, %s571_s9 }
  0x5d   : > { %s292_s12 = scalar_select %p291_p4, %s864_s4, 1 }
  0x5e   : > { %s448_s8 = sshll.u32 %s284_s18, 4  ;;  %s431_s30 = scalar_lea.sflag [#allocation5], %s979_s21  ;;  %s1016_s8 = int_to_ptr.vmem [resolvable:$true] %s448_s8 }
  0x5f   : > { %595 = vmatpush3.bf16.msra.mxu0 %v594_v8  ;;  %s565_s20 = sshll.u32 %s292_s12, 3  ;;  %s724_s19 = scalar_lea.vmem %s1016_s8, 128 }
  0x60   : > { %s294_s15 = scalar_lea.vmem %s1065_s6, %s565_s20  ;;  %p725_p6 = scmp.ne.s32.totalorder %s1016_s8, %s724_s19 }
  0x61   : > { %s804_s4 = smov [#allocation8]  }
  0x62   : > { %588 = vmatmul.mubr.msk.f32.vlgmr.msra.gmra.mrb[0].mxu0 %vm307_vm1, %v295_v9  ;;  %p726_p8 = pnand %p725_p6, %p934_p12  ;;  %s728_s22 = sshll.u32 %s804_s4, 4  ;;  %s729_s22 = int_to_ptr.vmem [resolvable:$false] %s728_s22 }
  0x63   : > { %s730_s11 = scalar_lea.vmem %s729_s22, 256  ;;  %p731_p13 = scmp.lt.s32.totalorder %s1016_s8, %s729_s22 }
  0x64   : > { %p727_p10 = pneg %p726_p8  ;;  %p732_p3 = scmp.lt.s32.totalorder %s730_s11, %s724_s19 }
  0x66   : > { %p733_p7 = por %p732_p3, %p731_p13 }
  0x68   : > { %p734_p9 = pnand %p733_p7, %p727_p10 }
 0x135   : > { %v377_v11 = vpop.f32.mrb[0].mxu0 }
 0x136   : > { %v378_v12 = vadd.f32 %v566_v10, %v377_v11  ;;  %v589_v13 = vpop.f32.mrb[1].mxu0 }
 0x138   : > { %660 = vtanh.f32 %v378_v12 }
 0x142   : > { %v661_v15 = vpop.eup %660 }
 0x143   : > { %v389_v16 = vmul.f32 %v661_v15, %v568_v14 }
 0x145   : > { %v391_v17 = vsel %vm390_vm2, %v389_v16, 0.0 }
 0x146   : > { %392 = vadd.xlane.f32.xlu0 %v391_v17 }
 0x1d3   : > { %v393_v20 = vpop.xlane.xlu0 %392 }
 0x1d4   : > { %v401_v21 = vadd.f32 %v569_v19, %v393_v20 }
 0x1d6   : > { %v403_v22 = vsel %vm402_vm3, %v401_v21, -inf }
 0x1d7   : > { %v404_v23 = vrot.slane %v403_v22, 4 }
 0x1d9   : > { %v405_v24 = vmax.f32 %v403_v22, %v404_v23 }
 0x1db   : > { %v406_v25 = vrot.slane %v405_v24, 2 }
 0x1dd   : > { %v407_v26 = vmax.f32 %v405_v24, %v406_v25 }
 0x1df   : > { %v408_v27 = vrot.slane %v407_v26, 1 }
 0x1e1   : > { %v409_v28 = vmax.f32 %v407_v26, %v408_v27 }
 0x1e3   : > { %v410_v29 = vsub.f32 %v401_v21, %v409_v28 }
 0x1e5   : > { %v411_v30 = vmul.f32 1.442695, %v410_v29 }
 0x1e7   : > { %662 = vpow2.f32 %v411_v30 }
 0x1f1   : > { %v663_v31 = vpop.eup %662 }
 0x1f2   : > { %v413_v32 = vsel %vm402_vm3, %v663_v31, 0.0 }
 0x1f3   : > { %v414_v33 = vrot.slane %v413_v32, 4 }
 0x1f5   : > { %v415_v34 = vadd.f32 %v414_v33, %v413_v32 }
 0x1f7   : > { %v416_v35 = vrot.slane %v415_v34, 2 }
 0x1f9   : > { %v417_v36 = vadd.f32 %v416_v35, %v415_v34 }
 0x1fb   : > { %v418_v37 = vrot.slane %v417_v36, 1 }
 0x1fd   : > { %v419_v38 = vadd.f32 %v418_v37, %v417_v36 }
 0x1ff   : > { %664 = vrcp.f32 %v419_v38 }
 0x209   : > { %v665_v39 = vpop.eup %664 }
 0x20a   : > { %v421_v40 = vmul.f32 %v665_v39, %v663_v31 }
 0x20c   : > { %425 = vperm.xlu0 %659, %v421_v40   ;;  %422 = vst.msk [vmem:[%s294_s15] sm:$0xff] %vm402_vm3, %v421_v40 }
 0x28b   : > { %v426_v41 = vpop.permute.xlu0 %425 }
 0x28c   : > { %v428_v42 = vmul.f32 %v426_v41, %v295_v9 }
 0x28e   : > { %429 = vst.msk [vmem:[%s284_s18] sm:$0xff] %vm307_vm1, %v428_v42 }
 0x28f   : > { %737 = shalt.err (!%p734_p9)
}
 0x290   : > { %s738_s21 = scalar_lea.hbm %s1014_s28, 128  ;;  %s742_s16 = scalar_lea.hbm %s1064_s5, 256 }
 0x291   : > { %p739_p2 = scmp.ne.s32.totalorder %s1014_s28, %s738_s21  ;;  %p743_p11 = scmp.lt.u32.totalorder %s1014_s28, %s1064_s5 }
 0x292   : > { %p744_p1 = scmp.lt.u32.totalorder %s742_s16, %s738_s21  ;;  %p746_p6 = scmp.lt.u32.totalorder %s738_s21, %s1014_s28 }
 0x293   : > { %p740_p5 = pnand %p739_p2, %p934_p12 }
 0x294   : > { %p745_p4 = por %p744_p1, %p743_p11 }
 0x295   : > { %p741_p0 = pneg %p740_p5 }
 0x296   : > { %p747_p8 = por %p746_p6, %p745_p4 }
 0x298   : > { %p748_p10 = pnand %p747_p8, %p741_p0 }
 0x29a   : > { %751 = shalt.err (!%p748_p10)
}
 0x29b   : > { %602 = dma.vmem_to_hbm [thread:$0]  (%p934_p12), %s1016_s8, 128, %s1014_s28, %s431_s30  }
 0x29c PF: > { %s463_s9 = sand.u32 1, %s782_s23   ;;  %p1080_p13 = scmp.ne.s32.totalorder %s1070_s29, 0 }
 0x29d   : > { %p1081_p3 = scmp.ge.s32.totalorder %s794_s26, 2  ;;  %s464_s18 = scalar_lea.sflag [#allocation5], %s463_s9 }
 0x29f   : > { %p613_p7 = pnand %p1081_p3, %p1080_p13 }
 0x2a1   : > { %777 = dma.done.wait (!%p613_p7), %s464_s18, 128  }
 0x2a2   : > { %779 = vsyncadd (!%p613_p7), %s464_s18, 4294967168  ;;  %p23_p9 = scmp.ge.s32.totalorder %s899_s10, 4   ;;  %s1082_s23 = smov %s786_s24 }
 0x2a3   : > { %s1083_s24 = smov %s790_s25  ;;  %s1084_s25 = smov %s930_s13 }
 0x2a4   : > { %s1085_s26 = smov %s899_s10  ;;  %25 = sbr.rel (!%p23_p9) target bundleno = 9 (0x9), region = 101 }
 0x2ab   :  { %476 = vsyncpa [#allocation4], 1 }
 0x2ac   :  { %478 = vsyncpa [#allocation4 + $0x1], 1 }
 0x2ad   :  { %479 = vsyncpa [#allocation7], 1 }
 0x2ae   :  { %480 = vsyncpa [#allocation5], 1 }
 0x2af   :  { %482 = vsyncpa [#allocation5 + $0x1], 1 }

</bundles_post_ra>
